<compile_context>
chip_gen: v5e
topology: v5e:2x2
jax: 0.10.0
libtpu: 0.0.40
codegen_flags: <defaults>
</compile_context>

<pallas_src>
import functools

import jax
import jax.numpy as jnp
from jax.experimental import pallas as pl
from jax.experimental.pallas import tpu as pltpu


# ----------------------------------------------------------------------------- #
# Helpers / tile configuration (chosen once, used at build time AND call time)
# ----------------------------------------------------------------------------- #
def _round_up(x, m):
    return ((x + m - 1) // m) * m


_VMEM_LIMIT = 32 * 1024 * 1024


def _gemm_config(k, n):
    """(kpad, tk, npad, tn) for a (M,k)@(k,n) GEMM."""
    kp8 = _round_up(k, 8)
    if kp8 <= 1024:
        # Single K step; full-dim block is legal even when not 128-aligned
        # (avoids padding K=64 layer1 reductions up to 128).
        kpad, tk = kp8, kp8
    else:
        cands = [(t, _round_up(k, t)) for t in (512, 256)]
        best = min(p for _, p in cands)
        tk = max(t for t, p in cands if p <= best * 1.125)   # prefer 512 when pad waste is small
        kpad = _round_up(k, tk)
    if n < 128:
        npad = _round_up(n, 8)
        tn = npad
    else:
        npad = _round_up(n, 128)
        tn = 128
        for t in (512, 256):
            if npad % t == 0 and npad // t >= 2:              # keep grid_n >= 2 (v7x megacore)
                tn = t
                break
    return kpad, tk, npad, tn


def _pick_tm(m):
    cands = (256, 128, 64, 32)                                # min 32: bf16 sublane-native
    return min(cands, key=lambda t: (_round_up(m, t), -t))


def _weight_spec(shape, index_map, buffers):
    if buffers and hasattr(pl, "Buffered"):
        try:
            return pl.BlockSpec(shape, index_map, pipeline_mode=pl.Buffered(buffers))
        except Exception:
            pass
    return pl.BlockSpec(shape, index_map)


# ----------------------------------------------------------------------------- #
# Tiled fused matmul:  y = relu?((x @ w) + shift [+ identity])
# (BN scale already folded into w at build time.)
# ----------------------------------------------------------------------------- #
def _matmul_kernel(x_ref, w_ref, shift_ref, *rest, relu, fuse_add):
    if fuse_add:
        id_ref, o_ref, acc_ref = rest
    else:
        id_ref = None
        o_ref, acc_ref = rest

    kk = pl.program_id(2)

    @pl.when(kk == 0)
    def _():
        acc_ref[...] = jnp.zeros_like(acc_ref)

    acc_ref[...] += jnp.dot(x_ref[...], w_ref[...],
                            preferred_element_type=jnp.float32)

    @pl.when(kk == pl.num_programs(2) - 1)
    def _():
        y = acc_ref[...] + shift_ref[...]                     # f32 epilogue
        if fuse_add:
            y = y + id_ref[...].astype(jnp.float32)
        if relu:
            y = jnp.maximum(y, 0.0)
        o_ref[...] = y.astype(o_ref.dtype)


@functools.lru_cache(maxsize=None)
def _matmul_call(m, k, n, tm, tk, tn, relu, fuse_add, out_dtype_name, w_buffers):
    out_dtype = jnp.dtype(out_dtype_name)
    grid = (m // tm, n // tn, k // tk)

    in_specs = [
        pl.BlockSpec((tm, tk), lambda i, j, kk: (i, kk)),
        _weight_spec((tk, tn), lambda i, j, kk: (kk, j), w_buffers),
        pl.BlockSpec((1, tn), lambda i, j, kk: (0, j)),
    ]
    if fuse_add:
        in_specs.append(pl.BlockSpec((tm, tn), lambda i, j, kk: (i, j)))

    bytes_accessed = (m * k + k * n) * 2 + m * n * out_dtype.itemsize + 4 * n
    if fuse_add:
        bytes_accessed += m * n * 2

    return pl.pallas_call(
        functools.partial(_matmul_kernel, relu=relu, fuse_add=fuse_add),
        out_shape=jax.ShapeDtypeStruct((m, n), out_dtype),
        grid_spec=pltpu.PrefetchScalarGridSpec(
            num_scalar_prefetch=0,
            grid=grid,
            in_specs=in_specs,
            out_specs=pl.BlockSpec((tm, tn), lambda i, j, kk: (i, j)),
            scratch_shapes=[pltpu.VMEM((tm, tn), jnp.float32)],
        ),
        compiler_params=pltpu.CompilerParams(
            dimension_semantics=("parallel", "parallel", "arbitrary"),
            vmem_limit_bytes=_VMEM_LIMIT),
        cost_estimate=pl.CostEstimate(flops=2 * m * k * n, transcendentals=0,
                                      bytes_accessed=bytes_accessed),
    )


def matmul_affine(x, w, shift, tk, tn, *, relu, identity=None,
                  out_dtype=jnp.bfloat16):
    """x:(M,K) bf16/f32, w:(Kpad,Npad) bf16 pre-padded, shift:(1,Npad) f32."""
    m, k = x.shape
    kpad, npad = w.shape
    tm = _pick_tm(m)
    mpad = _round_up(m, tm)

    xb = x.astype(jnp.bfloat16)
    if (mpad, kpad) != (m, k):
        xb = jnp.pad(xb, ((0, mpad - m), (0, kpad - k)))

    args = [xb, w, shift]
    fuse_add = identity is not None
    if fuse_add:
        idb = identity.astype(jnp.bfloat16)
        if idb.shape != (mpad, npad):
            idb = jnp.pad(idb, ((0, mpad - idb.shape[0]), (0, npad - idb.shape[1])))
        args.append(idb)

    # Deeper weight pipeline only for tiny-M, multi-K-step (pure weight stream) GEMMs.
    w_buffers = 3 if (mpad <= 32 and kpad // tk >= 3) else 0

    fn = _matmul_call(mpad, kpad, npad, tm, tk, tn, bool(relu), fuse_add,
                      jnp.dtype(out_dtype).name, w_buffers)
    out = fn(*args)
    if mpad != m:
        out = out[:m]
    return out


# ----------------------------------------------------------------------------- #
# Fused 3x3 / stride-2 / pad-1 max pool (single kernel, no 9x HBM stack)
# ----------------------------------------------------------------------------- #
def _maxpool_kernel(x_ref, o_ref, *, ho, wo):
    x = x_ref[...]                      # (4, he, we, c): ee / eo / oe / oo parities
    ee, eo, oe, oo = x[0], x[1], x[2], x[3]
    # reduce over the 3 columns of each window, then over the 3 rows
    a = jnp.maximum(jnp.maximum(ee[:, :wo, :], eo[:, :wo, :]), ee[:, 1:wo + 1, :])
    b = jnp.maximum(jnp.maximum(oe[:, :wo, :], oo[:, :wo, :]), oe[:, 1:wo + 1, :])
    o_ref[0] = jnp.maximum(jnp.maximum(a[:ho], b[:ho]), a[1:ho + 1])


@functools.lru_cache(maxsize=None)
def _maxpool_call(n, he, we, ho, wo, c, dtype_name):
    return pl.pallas_call(
        functools.partial(_maxpool_kernel, ho=ho, wo=wo),
        out_shape=jax.ShapeDtypeStruct((n, ho, wo, c), jnp.dtype(dtype_name)),
        grid_spec=pltpu.PrefetchScalarGridSpec(
            num_scalar_prefetch=0,
            grid=(n,),
            in_specs=[pl.BlockSpec((4, he, we, c), lambda i: (i, 0, 0, 0))],
            out_specs=pl.BlockSpec((1, ho, wo, c), lambda i: (i, 0, 0, 0)),
        ),
        compiler_params=pltpu.CompilerParams(dimension_semantics=("parallel",)),
    )


def maxpool_3x3_s2_p1(x):
    n, h, w, c = x.shape
    ho = (h - 1) // 2 + 1
    wo = (w - 1) // 2 + 1
    he, we = ho + 1, wo + 1
    xp = jnp.pad(x, ((0, 0), (1, 2 * he - h - 1), (1, 2 * we - w - 1), (0, 0)),
                 constant_values=-jnp.inf)
    # split even/odd rows & columns once (cheap layout shuffle, 1x input size)
    xr = xp.reshape(n, he, 2, we, 2, c).transpose(0, 2, 4, 1, 3, 5)
    xr = xr.reshape(n * 4, he, we, c)
    return _maxpool_call(n, he, we, ho, wo, c, xp.dtype.name)(xr)


# ----------------------------------------------------------------------------- #
# Fused tail: global avg pool -> fc(2048->1000) -> both head MLPs, one kernel.
# ----------------------------------------------------------------------------- #
def _tail_kernel(x_ref, fw_ref, fb_ref,
                 w1c, b1c, w2c, b2c, w3c, b3c,
                 w1r, b1r, w2r, b2r, w3r, b3r,
                 c_ref, r_ref, *, inv_hw):
    x = x_ref[...].astype(jnp.float32)                    # (B, HW, 2048)
    pooled = jnp.sum(x, axis=1) * inv_hw                  # (B, 2048) global avg pool
    feats = jnp.dot(pooled.astype(jnp.bfloat16), fw_ref[...],
                    preferred_element_type=jnp.float32) + fb_ref[...]

    def mlp(w1, b1, w2, b2, w3, b3):
        h = jnp.dot(feats.astype(jnp.bfloat16), w1[...],
                    preferred_element_type=jnp.float32) + b1[...]
        h = jnp.maximum(h, 0.0)
        h = jnp.dot(h.astype(jnp.bfloat16), w2[...],
                    preferred_element_type=jnp.float32) + b2[...]
        h = jnp.maximum(h, 0.0)
        return jnp.dot(h.astype(jnp.bfloat16), w3[...],
                       preferred_element_type=jnp.float32) + b3[...]

    c_ref[...] = mlp(w1c, b1c, w2c, b2c, w3c, b3c)
    r_ref[...] = mlp(w1r, b1r, w2r, b2r, w3r, b3r)


@functools.lru_cache(maxsize=None)
def _tail_call(batch, hw):
    vmem = lambda: pl.BlockSpec(memory_space=pltpu.MemorySpace.VMEM)
    return pl.pallas_call(
        functools.partial(_tail_kernel, inv_hw=1.0 / hw),
        out_shape=(jax.ShapeDtypeStruct((batch, 5), jnp.float32),
                   jax.ShapeDtypeStruct((batch, 4), jnp.float32)),
        in_specs=[vmem() for _ in range(15)],
        out_specs=(vmem(), vmem()),
        compiler_params=pltpu.CompilerParams(vmem_limit_bytes=_VMEM_LIMIT),
    )


def tail_forward(x_nhwc, params):
    n, h, w, c = x_nhwc.shape
    xr = x_nhwc.reshape(n, h * w, c)
    args = [xr, params["fc"]["w"], params["fc"]["b"]]
    for name in ("classify_fc1", "classify_fc2", "classify_fc3",
                 "regression_fc1", "regression_fc2", "regression_fc3"):
        lp = params[name]
        args.append(lp["w"])
        args.append(lp["b"])
    return _tail_call(n, h * w)(*args)


# ----------------------------------------------------------------------------- #
# Plain-JAX glue: im2col (TODO: fuse into GEMM), conv wrapper
# ----------------------------------------------------------------------------- #
def im2col(x, k, stride, pad):
    """x: (N, H, W, C) -> (N*Ho*Wo, k*k*C), (kh, kw, c) flattening order."""
    n, h, w, c = x.shape
    if pad:
        x = jnp.pad(x, ((0, 0), (pad, pad), (pad, pad), (0, 0)))
    hp, wp = h + 2 * pad, w + 2 * pad
    ho = (hp - k) // stride + 1
    wo = (wp - k) // stride + 1
    if k == 1 and stride == 1 and pad == 0:
        return x.reshape(n * h * w, c), (n, h, w)
    patches = []
    for i in range(k):
        for j in range(k):
            patches.append(
                x[:, i: i + stride * (ho - 1) + 1: stride,
                  j: j + stride * (wo - 1) + 1: stride, :])
    cols = jnp.stack(patches, axis=3)  # (N, Ho, Wo, k*k, C)
    return cols.reshape(n * ho * wo, k * k * c), (n, ho, wo)


def conv_bn_act(x, cp, relu, identity=None):
    cols, (n, ho, wo) = im2col(x, cp["k"], cp["stride"], cp["pad"])
    cout = cp["nout"]
    idm = identity.reshape(n * ho * wo, cout) if identity is not None else None
    y = matmul_affine(cols, cp["w"], cp["shift"], cp["tk"], cp["tn"],
                      relu=relu, identity=idm, out_dtype=jnp.bfloat16)
    return y.reshape(n, ho, wo, cout)


# ----------------------------------------------------------------------------- #
# Deterministic parameter construction (pre-padded, pre-cast, BN scale folded)
# ----------------------------------------------------------------------------- #
_KEY = jax.random.PRNGKey(0)
_COUNTER = [0]


def _next_key():
    _COUNTER[0] += 1
    return jax.random.fold_in(_KEY, _COUNTER[0])


def make_conv_bn(cin, cout, k, stride, pad):
    kk = k * k * cin
    w = jax.random.normal(_next_key(), (kk, cout), jnp.float32) / jnp.sqrt(
        jnp.float32(kk))
    scale = 1.0 + 0.1 * jax.random.normal(_next_key(), (cout,), jnp.float32)
    shift = 0.05 * jax.random.normal(_next_key(), (cout,), jnp.float32)
    kpad, tk, npad, tn = _gemm_config(kk, cout)
    wf = w * scale[None, :]                               # fold BN scale into weights
    wq = jnp.zeros((kpad, npad), jnp.float32).at[:kk, :cout].set(wf)
    sh = jnp.zeros((1, npad), jnp.float32).at[0, :cout].set(shift)
    return {"w": wq.astype(jnp.bfloat16), "shift": sh,
            "k": k, "stride": stride, "pad": pad,
            "tk": tk, "tn": tn, "nout": cout}


def make_linear(cin, cout, cin_pad=None, cout_pad=None):
    cin_pad = cin_pad or cin
    cout_pad = cout_pad or cout
    w = jax.random.normal(_next_key(), (cin, cout), jnp.float32) / jnp.sqrt(
        jnp.float32(cin))
    b = 0.05 * jax.random.normal(_next_key(), (cout,), jnp.float32)
    wp = jnp.zeros((cin_pad, cout_pad), jnp.float32).at[:cin, :cout].set(w)
    bp = jnp.zeros((1, cout_pad), jnp.float32).at[0, :cout].set(b)
    return {"w": wp.astype(jnp.bfloat16), "b": bp}


def make_resnet50_params():
    p = {"conv1": make_conv_bn(3, 64, 7, 2, 3)}
    layers = []
    inplanes = 64
    for planes, num_blocks, stride in [(64, 3, 1), (128, 4, 2),
                                       (256, 6, 2), (512, 3, 2)]:
        layer = []
        for b in range(num_blocks):
            s = stride if b == 0 else 1
            block = {
                "conv1": make_conv_bn(inplanes, planes, 1, 1, 0),
                "conv2": make_conv_bn(planes, planes, 3, s, 1),
                "conv3": make_conv_bn(planes, planes * 4, 1, 1, 0),
            }
            if b == 0:
                block["downsample"] = make_conv_bn(inplanes, planes * 4, 1, s, 0)
            layer.append(block)
            inplanes = planes * 4
        layers.append(layer)
    p["layers"] = layers
    # resnet.fc -> 1000-d features; outputs padded 1000 -> 1024 (zero cols), and the
    # head fc1 weights padded 1000 -> 1024 on their input dim (zero rows) to match.
    p["fc"] = make_linear(2048, 1000, cout_pad=1024)
    p["classify_fc1"] = make_linear(1000, 256, cin_pad=1024)
    p["classify_fc2"] = make_linear(256, 32)
    p["classify_fc3"] = make_linear(32, 5)
    p["regression_fc1"] = make_linear(1000, 256, cin_pad=1024)
    p["regression_fc2"] = make_linear(256, 32)
    p["regression_fc3"] = make_linear(32, 4)
    return p


# ----------------------------------------------------------------------------- #
# Forward pass (matches the PyTorch module semantics)
# ----------------------------------------------------------------------------- #
def bottleneck(x, bp):
    identity = (conv_bn_act(x, bp["downsample"], relu=False)
                if "downsample" in bp else x)
    out = conv_bn_act(x, bp["conv1"], relu=True)
    out = conv_bn_act(out, bp["conv2"], relu=True)
    # conv3 with fused residual add + ReLU in the GEMM epilogue.
    out = conv_bn_act(out, bp["conv3"], relu=True, identity=identity)
    return out


def resnet50_forward(params, x_nchw):
    # PyTorch gives NCHW; convert once to NHWC, bf16 activations in the trunk.
    x = jnp.transpose(x_nchw, (0, 2, 3, 1)).astype(jnp.bfloat16)
    x = conv_bn_act(x, params["conv1"], relu=True)
    x = maxpool_3x3_s2_p1(x)
    for layer in params["layers"]:
        for block in layer:
            x = bottleneck(x, block)
    # x.view(x.size(0), -1) is a no-op on the 1000-d feature vector.
    c, r = tail_forward(x, params)       # avgpool + fc + both head MLPs, one kernel
    return c, r


if __name__ == "__main__":
    params = make_resnet50_params()
    # Small input consistent with ResNet-50 (spatial 32 keeps every stage >= 1x1).
    x = jax.random.normal(jax.random.PRNGKey(0), (2, 3, 32, 32), jnp.float32)
    c, r = resnet50_forward(params, x)
    jax.block_until_ready((c, r))
    assert c.shape == (2, 5), c.shape
    assert r.shape == (2, 4), r.shape
    assert bool(jnp.all(jnp.isfinite(c))) and bool(jnp.all(jnp.isfinite(r)))
    print("KERNEL_OK")
</pallas_src>

<mosaic_0001>
module attributes {stable_mosaic.version = 11 : i64} {
  func.func @_matmul_kernel(%arg0: i32, %arg1: i32, %arg2: i32, %arg3: memref<256x152xbf16, #tpu.memory_space<vmem>>, %arg4: memref<152x64xbf16, #tpu.memory_space<vmem>>, %arg5: memref<1x64xf32, #tpu.memory_space<vmem>>, %arg6: memref<256x64xbf16, #tpu.memory_space<vmem>>, %arg7: memref<256x64xf32, #tpu.memory_space<vmem>>) attributes {dimension_semantics = [#tpu.dimension_semantics<parallel>, #tpu.dimension_semantics<parallel>, #tpu.dimension_semantics<arbitrary>], iteration_bounds = array<i64: 2, 1, 1>, scalar_prefetch = 0 : i64, scratch_operands = 1 : i64, tpu.core_type = #tpu.core_type<tc>, window_params = [{transform_indices = @transform_0, window_bounds = array<i64: 256, 152>}, {transform_indices = @transform_1, window_bounds = array<i64: 152, 64>}, {transform_indices = @transform_2, window_bounds = array<i64: 1, 64>}, {transform_indices = @transform_3, window_bounds = array<i64: 256, 64>}]} {
    %c0_i32 = arith.constant 0 : i32
    %0 = arith.cmpi eq, %arg2, %c0_i32 : i32
    %1 = arith.extui %0 : i1 to i32
    %c0_i32_0 = arith.constant 0 : i32
    %2 = arith.cmpi ne, %1, %c0_i32_0 : i32
    scf.if %2 {
      %cst_10 = arith.constant 0.000000e+00 : f32
      %12 = vector.broadcast %cst_10 : f32 to vector<256x64xf32>
      %c0_11 = arith.constant 0 : index
      %c0_12 = arith.constant 0 : index
      %13 = vector.load %arg7[%c0_11, %c0_12] : memref<256x64xf32, #tpu.memory_space<vmem>>, vector<256x64xf32>
      tpu.vector_store %arg7[%c0_11, %c0_12], %12 {strides = array<i32>} : memref<256x64xf32, #tpu.memory_space<vmem>>, vector<256x64xf32>,
    } else {
    }
    %c0 = arith.constant 0 : index
    %c0_1 = arith.constant 0 : index
    %3 = vector.load %arg7[%c0, %c0_1] : memref<256x64xf32, #tpu.memory_space<vmem>>, vector<256x64xf32>
    %c0_2 = arith.constant 0 : index
    %c0_3 = arith.constant 0 : index
    %4 = vector.load %arg3[%c0_2, %c0_3] : memref<256x152xbf16, #tpu.memory_space<vmem>>, vector<256x152xbf16>
    %c0_4 = arith.constant 0 : index
    %c0_5 = arith.constant 0 : index
    %5 = vector.load %arg4[%c0_4, %c0_5] : memref<152x64xbf16, #tpu.memory_space<vmem>>, vector<152x64xbf16>
    %cst = arith.constant dense<0.000000e+00> : vector<256x64xf32>
    %6 = tpu.matmul %4, %5, %cst {dimension_numbers = #tpu.dot_dimension_numbers<[1], [0], [0], [1], [0, 0, 1, 1], [], []>} : vector<256x152xbf16>, vector<152x64xbf16>, vector<256x64xf32> -> vector<256x64xf32>
    %7 = arith.addf %3, %6 : vector<256x64xf32>
    %c0_6 = arith.constant 0 : index
    %c0_7 = arith.constant 0 : index
    %8 = vector.load %arg7[%c0_6, %c0_7] : memref<256x64xf32, #tpu.memory_space<vmem>>, vector<256x64xf32>
    tpu.vector_store %arg7[%c0_6, %c0_7], %7 {strides = array<i32>} : memref<256x64xf32, #tpu.memory_space<vmem>>, vector<256x64xf32>,
    %c0_i32_8 = arith.constant 0 : i32
    %9 = arith.cmpi eq, %arg2, %c0_i32_8 : i32
    %10 = arith.extui %9 : i1 to i32
    %c0_i32_9 = arith.constant 0 : i32
    %11 = arith.cmpi ne, %10, %c0_i32_9 : i32
    scf.if %11 {
      %c0_10 = arith.constant 0 : index
      %c0_11 = arith.constant 0 : index
      %12 = vector.load %arg7[%c0_10, %c0_11] : memref<256x64xf32, #tpu.memory_space<vmem>>, vector<256x64xf32>
      %c0_12 = arith.constant 0 : index
      %c0_13 = arith.constant 0 : index
      %13 = vector.load %arg5[%c0_12, %c0_13] : memref<1x64xf32, #tpu.memory_space<vmem>>, vector<1x64xf32>
      %14 = vector.broadcast %13 : vector<1x64xf32> to vector<256x64xf32>
      %15 = arith.addf %12, %14 : vector<256x64xf32>
      %cst_14 = arith.constant 0.000000e+00 : f32
      %16 = vector.broadcast %cst_14 : f32 to vector<256x64xf32>
      %17 = arith.maximumf %15, %16 : vector<256x64xf32>
      %18 = arith.truncf %17 : vector<256x64xf32> to vector<256x64xbf16>
      %c0_15 = arith.constant 0 : index
      %c0_16 = arith.constant 0 : index
      %19 = vector.load %arg6[%c0_15, %c0_16] : memref<256x64xbf16, #tpu.memory_space<vmem>>, vector<256x64xbf16>
      tpu.vector_store %arg6[%c0_15, %c0_16], %18 {strides = array<i32>} : memref<256x64xbf16, #tpu.memory_space<vmem>>, vector<256x64xbf16>,
    } else {
    }
    return
  }
  func.func @transform_0(%arg0: i32, %arg1: i32, %arg2: i32) -> (i32, i32) {
    %c0_i32 = arith.constant 0 : i32
    return %arg0, %arg2 : i32, i32
  }
  func.func @transform_1(%arg0: i32, %arg1: i32, %arg2: i32) -> (i32, i32) {
    %c0_i32 = arith.constant 0 : i32
    return %arg2, %arg1 : i32, i32
  }
  func.func @transform_2(%arg0: i32, %arg1: i32, %arg2: i32) -> (i32, i32) {
    %c0_i32 = arith.constant 0 : i32
    %c0_i32_0 = arith.constant 0 : i32
    return %c0_i32, %arg1 : i32, i32
  }
  func.func @transform_3(%arg0: i32, %arg1: i32, %arg2: i32) -> (i32, i32) {
    %c0_i32 = arith.constant 0 : i32
    return %arg0, %arg1 : i32, i32
  }
}

</mosaic_0001>

<bundles_post_ra>
// kernel: tpu_custom_call.1
= control target key start
LH: loop header
LB: loop body
LE: loop exit
PB: predicated region body
PF: predicated region fallthrough
CT: control target
= control target key end

     0   :  { %s1484_s12 = smov 0   ;;  %s1486_s13 = smov 0   ;;  %s1809_s0 = inlined_call_operand.vmem [shape: bf16[512,152], index: 0, kind: input, shape index: {}]   ;;  %s1810_s1 = inlined_call_operand.vmem [shape: bf16[152,64], index: 1, kind: input, shape index: {}]   ;;  %s1811_s2 = inlined_call_operand.vmem [shape: f32[1,64], index: 2, kind: input, shape index: {}]   ;;  %s1812_s3 = inlined_call_operand.vmem [shape: bf16[512,64], index: 3, kind: output, shape index: {}]  }
   0x1   :  { %s1488_s14 = smov 0  }
   0x2 LB: > { %s32_s15 = sadd.s32 1, %s1457_s13  ;;  %p1173_p0 = scmp.ge.s32.totalorder %s1461_s14, 1  ;;  %s1461_s14 = sphi %s1488_s14, %s13_s14   ;;  %s1457_s13 = sphi %s1486_s13, %s1814_s13   ;;  %s1453_s12 = sphi %s1484_s12, %s1813_s12  }
   0x3   : > { %p34_p1 = scmp.ge.s32.totalorder %s32_s15, 2  ;;  %p191_p2 = scmp.lt.s32.totalorder %s1461_s14, 3 }
   0x5   : > { %s1816_s15 = smov (%p34_p1, %s32_s15), 0  ;;  %p192_p3 = pnand %p1173_p0, %p191_p2 }
   0x6   : > { %s1174_s20 = sshll.u32 (!%p192_p3), %s1453_s12, 5 }
   0x7   : > { %195 = sbr.rel (%p192_p3) target bundleno = 317 (0x13d), region = 32  ;;  %p236_p4 = scmp.lt.s32.totalorder (!%p192_p3), %s1174_s20, 63 }
   0xc   : > { %v1401_v0 = vld [vmem:[%s1810_s1 + $0x38] sm:$0xff]  ;;  %v387_v1 = vld [vmem:[%s1810_s1 + $0x48] sm:$0xf]  ;;  %vm638_vm0 = vcmask 1043456   ;;  %v1400_v3 = vld [vmem:[%s1810_s1 + $0x30] sm:$0xff]  ;;  %s1818_s20 = smov (!%p236_p4, %s1174_s20), 63 }
   0xd   : > { %v569_v2 = vunpack.c.l.b16 %v387_v1  ;;  %642 = vmatpush.bf16.msra.mxu0 %v1401_v0  ;;  %1403 = vmatpush.bf16.msra.mxu2 %v1401_v0  ;;  %s1361_s23 = sshll.u32 %s1818_s20, 3  ;;  %v1402_v6 = vld [vmem:[%s1810_s1 + $0x40] sm:$0xff]  ;;  %v1399_v7 = vld [vmem:[%s1810_s1 + $0x28] sm:$0xff]  ;;  %vm589_vm1 = vcmask 195584   ;;  %v1397_v15 = vld [vmem:[%s1810_s1 + $0x18] sm:$0xff]  ;;  %vm272_vm2 = vcmask 523264  }
   0xe   : > { %s1523_s30 = scalar_lea.vmem %s1809_s0, %s1361_s23  ;;  %v1398_v12 = vld [vmem:[%s1810_s1 + $0x20] sm:$0xff]  ;;  %v1396_v16 = vld [vmem:[%s1810_s1 + $0x10] sm:$0xff]  ;;  %v1395_v17 = vld [vmem:[%s1810_s1 + $0x8] sm:$0xff]  ;;  %s1178_s19 = sshll.u32 %s1818_s20, 2  ;;  %vm1020_vm3 = vcmask 519168  }
   0xf   : > { %v579_v4 = vpack.c.b16 %v569_v2, %v569_v2  ;;  %v1362_v8 = vld [vmem:[%s1523_s30 + $0x4] sm:$0xf]  ;;  %v1183_v9 = vld [vmem:[%s1523_s30 + $0x8] sm:$0xf0]  ;;  %v1380_v11 = vld [vmem:[%s1523_s30 + $0x94] sm:$0xf]  ;;  %s1668_s23 = scalar_lea.vmem %s1812_s3, %s1178_s19 }
  0x10   : > { %v1186_v10 = vor.u32 %v1362_v8, %v1183_v9  ;;  %v1255_v13 = vld [vmem:[%s1523_s30 + $0x98] sm:$0xf0]  ;;  %v1364_v18 = vld [vmem:[%s1523_s30 + $0x14] sm:$0xf]  ;;  %v1382_v20 = vld [vmem:[%s1523_s30 + $0xa4] sm:$0xf] }
  0x11   : > { %v640_v5 = vsel %vm638_vm0, %v579_v4, 0  ;;  %643 = vmatpush.bf16.msra.mxu0 %v1400_v3  ;;  %1404 = vmatpush.bf16.msra.mxu2 %v1400_v3  ;;  %v1258_v14 = vor.u32 %v1380_v11, %v1255_v13  ;;  %v1191_v19 = vld [vmem:[%s1523_s30 + $0x18] sm:$0xf0]  ;;  %v1263_v21 = vld [vmem:[%s1523_s30 + $0xa8] sm:$0xf0]  ;;  %v1394_v23 = vld [vmem:[%s1810_s1] sm:$0xff] }
  0x12   : > { %737 = vmatpush.bf16.msra.mxu1 %v640_v5  ;;  %1411 = vmatpush.bf16.msra.mxu3 %v640_v5  ;;  %v1194_v22 = vor.u32 %v1364_v18, %v1191_v19  ;;  %v1181_v24 = vld [vmem:[%s1523_s30] sm:$0xf]  ;;  %v1363_v25 = vld [vmem:[%s1523_s30 + $0x4] sm:$0xf0]  ;;  %v1266_v26 = vor.u32 %v1382_v20, %v1263_v21  ;;  %v1366_v31 = vld [vmem:[%s1523_s30 + $0x24] sm:$0xf] }
  0x13   : > { %v1245_v27 = vld [vmem:[%s1523_s30 + $0x80] sm:$0xf]  ;;  %v1379_v28 = vld [vmem:[%s1523_s30 + $0x84] sm:$0xf0]  ;;  %v1182_v29 = vor.u32 %v1363_v25, %v1181_v24  ;;  %v1199_v32 = vld [vmem:[%s1523_s30 + $0x28] sm:$0xf0] }
  0x14   : > { %v1246_v30 = vor.u32 %v1379_v28, %v1245_v27  ;;  %v1384_v33 = vld [vmem:[%s1523_s30 + $0xb4] sm:$0xf]  ;;  %v1271_v34 = vld [vmem:[%s1523_s30 + $0xb8] sm:$0xf0]  ;;  %v1202_v35 = vor.u32 %v1366_v31, %v1199_v32  ;;  %v1189_v36 = vld [vmem:[%s1523_s30 + $0x10] sm:$0xf] }
  0x15   : > { %644 = vmatpush.bf16.msra.mxu0 %v1399_v7  ;;  %1405 = vmatpush.bf16.msra.mxu2 %v1399_v7  ;;  %v1365_v37 = vld [vmem:[%s1523_s30 + $0x14] sm:$0xf0]  ;;  %v1274_v38 = vor.u32 %v1384_v33, %v1271_v34  ;;  %v1253_v39 = vld [vmem:[%s1523_s30 + $0x90] sm:$0xf]  ;;  %v1368_v43 = vld [vmem:[%s1523_s30 + $0x34] sm:$0xf] }
  0x16   : > { %738 = vmatpush.bf16.msra.mxu1 %v1402_v6  ;;  %1412 = vmatpush.bf16.msra.mxu3 %v1402_v6  ;;  %v1381_v40 = vld [vmem:[%s1523_s30 + $0x94] sm:$0xf0]  ;;  %v1190_v41 = vor.u32 %v1365_v37, %v1189_v36  ;;  %v1207_v44 = vld [vmem:[%s1523_s30 + $0x38] sm:$0xf0]  ;;  %v1386_v45 = vld [vmem:[%s1523_s30 + $0xc4] sm:$0xf] }
  0x17   : > { %v1254_v42 = vor.u32 %v1381_v40, %v1253_v39  ;;  %v1279_v46 = vld [vmem:[%s1523_s30 + $0xc8] sm:$0xf0]  ;;  %v1210_v47 = vor.u32 %v1368_v43, %v1207_v44  ;;  %v1197_v48 = vld [vmem:[%s1523_s30 + $0x20] sm:$0xf]  ;;  %v1367_v49 = vld [vmem:[%s1523_s30 + $0x24] sm:$0xf0] }
  0x18   : > { %v1282_v50 = vor.u32 %v1386_v45, %v1279_v46  ;;  %v1261_v51 = vld [vmem:[%s1523_s30 + $0xa0] sm:$0xf]  ;;  %v1383_v52 = vld [vmem:[%s1523_s30 + $0xa4] sm:$0xf0]  ;;  %v1198_v53 = vor.u32 %v1367_v49, %v1197_v48  ;;  %v1370_v55 = vld [vmem:[%s1523_s30 + $0x44] sm:$0xf] }
  0x19   : > { %1343 = vmatmul.msk.bf16.vlgmr.msra.gmra.mxu1 %vm589_vm1, %v1186_v10  ;;  %645 = vmatpush.bf16.msra.mxu0 %v1398_v12  ;;  %v1262_v54 = vor.u32 %v1383_v52, %v1261_v51  ;;  %v1215_v56 = vld [vmem:[%s1523_s30 + $0x48] sm:$0xf0]  ;;  %v1388_v57 = vld [vmem:[%s1523_s30 + $0xd4] sm:$0xf]  ;;  %v1287_v58 = vld [vmem:[%s1523_s30 + $0xd8] sm:$0xf0] }
  0x1a   : > { %1352 = vmatmul.msk.bf16.vlgmr.msra.gmra.mxu3 %vm589_vm1, %v1258_v14  ;;  %1406 = vmatpush.bf16.msra.mxu2 %v1398_v12  ;;  %v1218_v59 = vor.u32 %v1370_v55, %v1215_v56  ;;  %v1205_v60 = vld [vmem:[%s1523_s30 + $0x30] sm:$0xf]  ;;  %v1369_v61 = vld [vmem:[%s1523_s30 + $0x34] sm:$0xf0]  ;;  %v1290_v62 = vor.u32 %v1388_v57, %v1287_v58  ;;  %v1372_v3 = vld [vmem:[%s1523_s30 + $0x54] sm:$0xf] }
  0x1b   : > { %v1269_v63 = vld [vmem:[%s1523_s30 + $0xb0] sm:$0xf]  ;;  %v1385_v0 = vld [vmem:[%s1523_s30 + $0xb4] sm:$0xf0]  ;;  %v1206_v1 = vor.u32 %v1369_v61, %v1205_v60  ;;  %v1223_v4 = vld [vmem:[%s1523_s30 + $0x58] sm:$0xf0] }
  0x1c   : > { %v1270_v2 = vor.u32 %v1385_v0, %v1269_v63  ;;  %v1390_v5 = vld [vmem:[%s1523_s30 + $0xe4] sm:$0xf]  ;;  %v1295_v6 = vld [vmem:[%s1523_s30 + $0xe8] sm:$0xf0]  ;;  %v1226_v7 = vor.u32 %v1372_v3, %v1223_v4  ;;  %v1213_v8 = vld [vmem:[%s1523_s30 + $0x40] sm:$0xf] }
  0x1d   : > { %646 = vmatpush.bf16.msra.mxu0 %v1397_v15  ;;  %v1371_v9 = vld [vmem:[%s1523_s30 + $0x44] sm:$0xf0]  ;;  %v1298_v10 = vor.u32 %v1390_v5, %v1295_v6  ;;  %v1277_v11 = vld [vmem:[%s1523_s30 + $0xc0] sm:$0xf]  ;;  %v1303_v18 = vld [vmem:[%s1523_s30 + $0xf8] sm:$0xf0] }
  0x1e   : > { %1407 = vmatpush.bf16.msra.mxu2 %v1397_v15  ;;  %v1387_v12 = vld [vmem:[%s1523_s30 + $0xc4] sm:$0xf0]  ;;  %v1214_v13 = vor.u32 %v1371_v9, %v1213_v8  ;;  %v1374_v15 = vld [vmem:[%s1523_s30 + $0x64] sm:$0xf]  ;;  %v1221_v20 = vld [vmem:[%s1523_s30 + $0x50] sm:$0xf] }
  0x1f   : > { %v1278_v14 = vor.u32 %v1387_v12, %v1277_v11  ;;  %v1373_v21 = vld [vmem:[%s1523_s30 + $0x54] sm:$0xf0]  ;;  %v1376_v27 = vld [vmem:[%s1523_s30 + $0x74] sm:$0xf]  ;;  %v1239_v28 = vld [vmem:[%s1523_s30 + $0x78] sm:$0xf0] }
  0x20   : > { %v1389_v24 = vld [vmem:[%s1523_s30 + $0xd4] sm:$0xf0]  ;;  %v1222_v25 = vor.u32 %v1373_v21, %v1221_v20  ;;  %v1375_v31 = vld [vmem:[%s1523_s30 + $0x64] sm:$0xf0]  ;;  %v1463_v32 = vmov 0.0  }
  0x21   : > { %647 = vmatpush.bf16.msra.mxu0 %v1396_v16  ;;  %273 = vst.msk [vmem:[#allocation2] sm:$0xff] %vm272_vm2, %v1463_v32  ;;  %v1293_v33 = vld [vmem:[%s1523_s30 + $0xe0] sm:$0xf]  ;;  %v1391_v34 = vld [vmem:[%s1523_s30 + $0xe4] sm:$0xf0] }
  0x22   : > { %1408 = vmatpush.bf16.msra.mxu2 %v1396_v16  ;;  %v1231_v16 = vld [vmem:[%s1523_s30 + $0x68] sm:$0xf0]  ;;  %274 = vst.msk [vmem:[#allocation2 + $0x8] sm:$0xff] %vm272_vm2, %v1463_v32  ;;  %v1294_v36 = vor.u32 %v1391_v34, %v1293_v33  ;;  %v1378_v37 = vld [vmem:[%s1523_s30 + $0x84] sm:$0xf] }
  0x23   : > { %v1234_v19 = vor.u32 %v1374_v15, %v1231_v16  ;;  %275 = vst.msk [vmem:[#allocation2 + $0x10] sm:$0xff] %vm272_vm2, %v1463_v32  ;;  %v1301_v43 = vld [vmem:[%s1523_s30 + $0xf0] sm:$0xf]  ;;  %v1393_v44 = vld [vmem:[%s1523_s30 + $0xf4] sm:$0xf0] }
  0x24   : > { %276 = vst.msk [vmem:[#allocation2 + $0x18] sm:$0xff] %vm272_vm2, %v1463_v32  ;;  %v1302_v46 = vor.u32 %v1393_v44, %v1301_v43 }
  0x25   : > { %648 = vmatpush.bf16.msra.mxu0 %v1395_v17  ;;  %277 = vst.msk [vmem:[#allocation2 + $0x20] sm:$0xff] %vm272_vm2, %v1463_v32 }
  0x26   : > { %1409 = vmatpush.bf16.msra.mxu2 %v1395_v17  ;;  %v1392_v17 = vld [vmem:[%s1523_s30 + $0xf4] sm:$0xf]  ;;  %278 = vst.msk [vmem:[#allocation2 + $0x28] sm:$0xff] %vm272_vm2, %v1463_v32 }
  0x27   : > { %279 = vst.msk [vmem:[#allocation2 + $0x30] sm:$0xff] %vm272_vm2, %v1463_v32 }
  0x28   : > { %280 = vst.msk [vmem:[#allocation2 + $0x38] sm:$0xff] %vm272_vm2, %v1463_v32 }
  0x29   : > { %1344 = vmatmul.msk.bf16.gmra.mxu1 %vm589_vm1, %v1194_v22  ;;  %649 = vmatpush.bf16.msra.mxu0 %v1394_v23  ;;  %v1306_v22 = vor.u32 %v1392_v17, %v1303_v18  ;;  %281 = vst.msk [vmem:[#allocation2 + $0x40] sm:$0xff] %vm272_vm2, %v1463_v32  ;;  %v306_v57 = vld [vmem:[#allocation2 + $0x8] sm:$0xff] }
  0x2a   : > { %1353 = vmatmul.msk.bf16.gmra.mxu3 %vm589_vm1, %v1266_v26  ;;  %1410 = vmatpush.bf16.msra.mxu2 %v1394_v23  ;;  %v1285_v23 = vld [vmem:[%s1523_s30 + $0xd0] sm:$0xf]  ;;  %282 = vst.msk [vmem:[#allocation2 + $0x48] sm:$0xff] %vm272_vm2, %v1463_v32 }
  0x2b   : > { %v1286_v26 = vor.u32 %v1389_v24, %v1285_v23  ;;  %283 = vst.msk [vmem:[#allocation2 + $0x50] sm:$0xff] %vm272_vm2, %v1463_v32  ;;  %v307_v3 = vld [vmem:[#allocation2 + $0x10] sm:$0xff]  ;;  %v308_v16 = vld [vmem:[#allocation2 + $0x18] sm:$0xff] }
  0x2c   : > { %650 = vmatmul.bf16.vlgmr.msra.gmra.mxu0 %v1182_v29  ;;  %v1242_v29 = vor.u32 %v1376_v27, %v1239_v28  ;;  %284 = vst.msk [vmem:[#allocation2 + $0x58] sm:$0xff] %vm272_vm2, %v1463_v32 }
  0x2d   : > { %690 = vmatmul.bf16.vlgmr.msra.gmra.mxu2 %v1246_v30  ;;  %v1229_v30 = vld [vmem:[%s1523_s30 + $0x60] sm:$0xf]  ;;  %285 = vst.msk [vmem:[#allocation2 + $0x60] sm:$0xff] %vm272_vm2, %v1463_v32 }
  0x2e   : > { %286 = vst.msk [vmem:[#allocation2 + $0x68] sm:$0xff] %vm272_vm2, %v1463_v32 }
  0x2f   : > { %287 = vst.msk [vmem:[#allocation2 + $0x70] sm:$0xff] %vm272_vm2, %v1463_v32 }
  0x30   : > { %288 = vst.msk [vmem:[#allocation2 + $0x78] sm:$0xff] %vm272_vm2, %v1463_v32 }
  0x31   : > { %289 = vst.msk [vmem:[#allocation2 + $0x80] sm:$0xff] %vm272_vm2, %v1463_v32 }
  0x32   : > { %290 = vst.msk [vmem:[#allocation2 + $0x88] sm:$0xff] %vm272_vm2, %v1463_v32 }
  0x33   : > { %291 = vst.msk [vmem:[#allocation2 + $0x90] sm:$0xff] %vm272_vm2, %v1463_v32 }
  0x34   : > { %292 = vst.msk [vmem:[#allocation2 + $0x98] sm:$0xff] %vm272_vm2, %v1463_v32 }
  0x35   : > { %293 = vst.msk [vmem:[#allocation2 + $0xa0] sm:$0xff] %vm272_vm2, %v1463_v32 }
  0x36   : > { %294 = vst.msk [vmem:[#allocation2 + $0xa8] sm:$0xff] %vm272_vm2, %v1463_v32 }
  0x37   : > { %295 = vst.msk [vmem:[#allocation2 + $0xb0] sm:$0xff] %vm272_vm2, %v1463_v32 }
  0x38   : > { %296 = vst.msk [vmem:[#allocation2 + $0xb8] sm:$0xff] %vm272_vm2, %v1463_v32 }
  0x39   : > { %1345 = vmatmul.msk.bf16.gmra.mxu1 %vm589_vm1, %v1202_v35  ;;  %v1230_v35 = vor.u32 %v1375_v31, %v1229_v30  ;;  %297 = vst.msk [vmem:[#allocation2 + $0xc0] sm:$0xff] %vm272_vm2, %v1463_v32  ;;  %v309_v30 = vld [vmem:[#allocation2 + $0x20] sm:$0xff] }
  0x3a   : > { %1354 = vmatmul.msk.bf16.gmra.mxu3 %vm589_vm1, %v1274_v38  ;;  %v1247_v38 = vld [vmem:[%s1523_s30 + $0x88] sm:$0xf0]  ;;  %298 = vst.msk [vmem:[#allocation2 + $0xc8] sm:$0xff] %vm272_vm2, %v1463_v32 }
  0x3b   : > { %v1250_v39 = vor.u32 %v1378_v37, %v1247_v38  ;;  %299 = vst.msk [vmem:[#allocation2 + $0xd0] sm:$0xff] %vm272_vm2, %v1463_v32  ;;  %v324_v27 = vld [vmem:[#allocation2 + $0x98] sm:$0xff] }
  0x3c   : > { %655 = vmatmul.bf16.gmra.mxu0 %v1190_v41  ;;  %v1237_v41 = vld [vmem:[%s1523_s30 + $0x70] sm:$0xf]  ;;  %300 = vst.msk [vmem:[#allocation2 + $0xd8] sm:$0xff] %vm272_vm2, %v1463_v32  ;;  %v325_v44 = vld [vmem:[#allocation2 + $0xa0] sm:$0xff] }
  0x3d   : > { %695 = vmatmul.bf16.gmra.mxu2 %v1254_v42  ;;  %v1377_v42 = vld [vmem:[%s1523_s30 + $0x74] sm:$0xf0]  ;;  %301 = vst.msk [vmem:[#allocation2 + $0xe0] sm:$0xff] %vm272_vm2, %v1463_v32 }
  0x3e   : > { %v1238_v45 = vor.u32 %v1377_v42, %v1237_v41  ;;  %302 = vst.msk [vmem:[#allocation2 + $0xe8] sm:$0xff] %vm272_vm2, %v1463_v32 }
  0x3f   : > { %303 = vst.msk [vmem:[#allocation2 + $0xf0] sm:$0xff] %vm272_vm2, %v1463_v32 }
  0x40   : > { %304 = vst.msk [vmem:[#allocation2 + $0xf8] sm:$0xff] %vm272_vm2, %v1463_v32 }
  0x49   : > { %1346 = vmatmul.msk.bf16.gmra.mxu1 %vm589_vm1, %v1210_v47 }
  0x4a   : > { %1355 = vmatmul.msk.bf16.gmra.mxu3 %vm589_vm1, %v1282_v50  ;;  %v305_v50 = vld [vmem:[#allocation2] sm:$0xff] }
  0x4c   : > { %660 = vmatmul.bf16.gmra.mxu0 %v1198_v53 }
  0x4d   : > { %700 = vmatmul.bf16.gmra.mxu2 %v1262_v54 }
  0x59   : > { %1347 = vmatmul.msk.bf16.gmra.mxu1 %vm589_vm1, %v1218_v59  ;;  %v1658_v59 = vld [vmem:[%s1811_s2] ss:$0 sm:$0xff] }
  0x5a   : > { %1356 = vmatmul.msk.bf16.gmra.mxu3 %vm589_vm1, %v1290_v62 }
  0x5c   : > { %665 = vmatmul.bf16.gmra.mxu0 %v1206_v1 }
  0x5d   : > { %705 = vmatmul.bf16.gmra.mxu2 %v1270_v2 }
  0x69   : > { %1348 = vmatmul.msk.bf16.gmra.mxu1 %vm589_vm1, %v1226_v7 }
  0x6a   : > { %1357 = vmatmul.msk.bf16.gmra.mxu3 %vm589_vm1, %v1298_v10 }
  0x6c   : > { %670 = vmatmul.bf16.gmra.mxu0 %v1214_v13  ;;  %v323_v13 = vld [vmem:[#allocation2 + $0x90] sm:$0xff] }
  0x6d   : > { %710 = vmatmul.bf16.gmra.mxu2 %v1278_v14 }
  0x79   : > { %1349 = vmatmul.msk.bf16.gmra.mxu1 %vm589_vm1, %v1234_v19 }
  0x7a   : > { %1358 = vmatmul.msk.bf16.gmra.mxu3 %vm589_vm1, %v1306_v22 }
  0x7c   : > { %675 = vmatmul.bf16.gmra.mxu0 %v1222_v25 }
  0x7d   : > { %715 = vmatmul.bf16.gmra.mxu2 %v1286_v26 }
  0x89   : > { %1350 = vmatmul.msk.bf16.gmra.mxu1 %vm589_vm1, %v1242_v29 }
  0x8c   : > { %680 = vmatmul.bf16.gmra.mxu0 %v1230_v35 }
  0x8d   : > { %720 = vmatmul.bf16.gmra.mxu2 %v1294_v36 }
  0x96   : > { %v740_v40 = vpop.f32.mrf.mxu1 }
  0x99   : > { %1351 = vmatmul.msk.bf16.gmra.mxu1 %vm589_vm1, %v1250_v39 }
  0x9c   : > { %685 = vmatmul.bf16.gmra.mxu0 %v1238_v45 }
  0x9d   : > { %725 = vmatmul.bf16.gmra.mxu2 %v1302_v46  ;;  %v785_v49 = vpop.f32.mrf.mxu3 }
  0x9e   : > { %v742_v47 = vpop.f32.mrf.mxu1 }
  0xa5   : > { %v787_v56 = vpop.f32.mrf.mxu3 }
  0xa6   : > { %v745_v48 = vpop.f32.mrf.mxu1 }
  0xa9   : > { %v651_v51 = vpop.f32.mrf.mxu0 }
  0xaa   : > { %v741_v52 = vadd.f32 %v740_v40, %v651_v51 }
  0xac   : > { %v820_v53 = vadd.f32 %v741_v52, %v305_v50 }
  0xad   : > { %v790_v7 = vpop.f32.mrf.mxu3 }
  0xae   : > { %v747_v54 = vpop.f32.mrf.mxu1  ;;  %853 = vst.msk [vmem:[#allocation2] sm:$0xff] %vm272_vm2, %v820_v53 }
  0xb0   : > { %v1653_v55 = vpop.f32.mrf.mxu2 }
  0xb1   : > { %v653_v58 = vpop.f32.mrf.mxu0 }
  0xb2   : > { %v743_v60 = vadd.f32 %v742_v47, %v653_v58 }
  0xb4   : > { %v821_v61 = vadd.f32 %v743_v60, %v306_v57 }
  0xb5   : > { %v888_v62 = vld [vmem:[#allocation2] sm:$0xff]  ;;  %v792_v22 = vpop.f32.mrf.mxu3 }
  0xb6   : > { %v750_v63 = vpop.f32.mrf.mxu1  ;;  %v924_v0 = vadd.f32 %v1658_v59, %v888_v62  ;;  %854 = vst.msk [vmem:[#allocation2 + $0x8] sm:$0xff] %vm272_vm2, %v821_v61 }
  0xb8   : > { %v956_v1 = vmax.f32 %v924_v0, 0.0  ;;  %v1663_v2 = vpop.f32.mrf.mxu2 }
  0xb9   : > { %v656_v4 = vpop.f32.mrf.mxu0 }
  0xba   : > { %v988_v5 = vpack.c.bf16 %v956_v1, %v956_v1  ;;  %v746_v6 = vadd.f32 %v745_v48, %v656_v4  ;;  %v310_v48 = vld [vmem:[#allocation2 + $0x28] sm:$0xff] }
  0xbc   : > { %1021 = vst.msk [vmem:[%s1668_s23] sm:$0xf] %vm1020_vm3, %v988_v5  ;;  %v822_v8 = vadd.f32 %v746_v6, %v307_v3  ;;  %v311_v5 = vld [vmem:[#allocation2 + $0x30] sm:$0xff] }
  0xbd   : > { %v889_v9 = vld [vmem:[#allocation2 + $0x8] sm:$0xff]  ;;  %v795_v41 = vpop.f32.mrf.mxu3 }
  0xbe   : > { %v752_v10 = vpop.f32.mrf.mxu1  ;;  %v925_v11 = vadd.f32 %v1658_v59, %v889_v9  ;;  %855 = vst.msk [vmem:[#allocation2 + $0x10] sm:$0xff] %vm272_vm2, %v822_v8 }
  0xc0   : > { %v957_v12 = vmax.f32 %v925_v11, 0.0  ;;  %v696_v14 = vpop.f32.mrf.mxu2 }
  0xc1   : > { %v786_v15 = vadd.f32 %v785_v49, %v696_v14  ;;  %v658_v17 = vpop.f32.mrf.mxu0 }
  0xc2   : > { %v989_v18 = vpack.c.bf16 %v957_v12, %v957_v12  ;;  %v748_v19 = vadd.f32 %v747_v54, %v658_v17 }
  0xc3   : > { %v838_v20 = vadd.f32 %v786_v15, %v323_v13 }
  0xc4   : > { %1022 = vst.msk [vmem:[%s1668_s23 + $0x4] sm:$0xf] %vm1020_vm3, %v989_v18  ;;  %v823_v21 = vadd.f32 %v748_v19, %v308_v16  ;;  %v327_v18 = vld [vmem:[#allocation2 + $0xb0] sm:$0xff] }
  0xc5   : > { %v890_v23 = vld [vmem:[#allocation2 + $0x10] sm:$0xff]  ;;  %871 = vst.msk [vmem:[#allocation2 + $0x90] sm:$0xff] %vm272_vm2, %v838_v20  ;;  %v797_v1 = vpop.f32.mrf.mxu3 }
  0xc6   : > { %v755_v24 = vpop.f32.mrf.mxu1  ;;  %v926_v25 = vadd.f32 %v1658_v59, %v890_v23  ;;  %856 = vst.msk [vmem:[#allocation2 + $0x18] sm:$0xff] %vm272_vm2, %v823_v21 }
  0xc8   : > { %v958_v26 = vmax.f32 %v926_v25, 0.0  ;;  %v698_v28 = vpop.f32.mrf.mxu2 }
  0xc9   : > { %v788_v29 = vadd.f32 %v787_v56, %v698_v28  ;;  %v661_v31 = vpop.f32.mrf.mxu0 }
  0xca   : > { %v990_v32 = vpack.c.bf16 %v958_v26, %v958_v26  ;;  %v751_v33 = vadd.f32 %v750_v63, %v661_v31  ;;  %v326_v63 = vld [vmem:[#allocation2 + $0xa8] sm:$0xff] }
  0xcb   : > { %v839_v34 = vadd.f32 %v788_v29, %v324_v27 }
  0xcc   : > { %1023 = vst.msk [vmem:[%s1668_s23 + $0x8] sm:$0xf] %vm1020_vm3, %v990_v32  ;;  %v906_v35 = vld [vmem:[#allocation2 + $0x90] sm:$0xff]  ;;  %v824_v36 = vadd.f32 %v751_v33, %v309_v30 }
  0xcd   : > { %v942_v37 = vadd.f32 %v1658_v59, %v906_v35  ;;  %v891_v38 = vld [vmem:[#allocation2 + $0x18] sm:$0xff]  ;;  %872 = vst.msk [vmem:[#allocation2 + $0x98] sm:$0xff] %vm272_vm2, %v839_v34  ;;  %v800_v26 = vpop.f32.mrf.mxu3 }
  0xce   : > { %v757_v39 = vpop.f32.mrf.mxu1  ;;  %v927_v40 = vadd.f32 %v1658_v59, %v891_v38  ;;  %857 = vst.msk [vmem:[#allocation2 + $0x20] sm:$0xff] %vm272_vm2, %v824_v36  ;;  %v328_v36 = vld [vmem:[#allocation2 + $0xb8] sm:$0xff] }
  0xcf   : > { %v974_v42 = vmax.f32 %v942_v37, 0.0 }
  0xd0   : > { %v959_v43 = vmax.f32 %v927_v40, 0.0  ;;  %v701_v45 = vpop.f32.mrf.mxu2  ;;  %v313_v40 = vld [vmem:[#allocation2 + $0x40] sm:$0xff] }
  0xd1   : > { %v1006_v46 = vpack.c.bf16 %v974_v42, %v974_v42  ;;  %v791_v47 = vadd.f32 %v790_v7, %v701_v45  ;;  %v663_v49 = vpop.f32.mrf.mxu0 }
  0xd2   : > { %v991_v50 = vpack.c.bf16 %v959_v43, %v959_v43  ;;  %v753_v51 = vadd.f32 %v752_v10, %v663_v49 }
  0xd3   : > { %1039 = vst.msk [vmem:[%s1668_s23 + $0x48] sm:$0xf] %vm1020_vm3, %v1006_v46  ;;  %v840_v52 = vadd.f32 %v791_v47, %v325_v44 }
  0xd4   : > { %1024 = vst.msk [vmem:[%s1668_s23 + $0xc] sm:$0xf] %vm1020_vm3, %v991_v50  ;;  %v907_v53 = vld [vmem:[#allocation2 + $0x98] sm:$0xff]  ;;  %v825_v54 = vadd.f32 %v753_v51, %v310_v48 }
  0xd5   : > { %v943_v56 = vadd.f32 %v1658_v59, %v907_v53  ;;  %v892_v57 = vld [vmem:[#allocation2 + $0x20] sm:$0xff]  ;;  %873 = vst.msk [vmem:[#allocation2 + $0xa0] sm:$0xff] %vm272_vm2, %v840_v52  ;;  %v802_v47 = vpop.f32.mrf.mxu3 }
  0xd6   : > { %v760_v58 = vpop.f32.mrf.mxu1  ;;  %v928_v60 = vadd.f32 %v1658_v59, %v892_v57  ;;  %858 = vst.msk [vmem:[#allocation2 + $0x28] sm:$0xff] %vm272_vm2, %v825_v54  ;;  %v329_v54 = vld [vmem:[#allocation2 + $0xc0] sm:$0xff] }
  0xd7   : > { %v975_v61 = vmax.f32 %v943_v56, 0.0 }
  0xd8   : > { %v960_v62 = vmax.f32 %v928_v60, 0.0  ;;  %v703_v0 = vpop.f32.mrf.mxu2  ;;  %v314_v60 = vld [vmem:[#allocation2 + $0x48] sm:$0xff] }
  0xd9   : > { %v1007_v3 = vpack.c.bf16 %v975_v61, %v975_v61  ;;  %v793_v4 = vadd.f32 %v792_v22, %v703_v0  ;;  %v666_v6 = vpop.f32.mrf.mxu0  ;;  %v312_v22 = vld [vmem:[#allocation2 + $0x38] sm:$0xff] }
  0xda   : > { %v992_v7 = vpack.c.bf16 %v960_v62, %v960_v62  ;;  %v756_v8 = vadd.f32 %v755_v24, %v666_v6 }
  0xdb   : > { %1040 = vst.msk [vmem:[%s1668_s23 + $0x4c] sm:$0xf] %vm1020_vm3, %v1007_v3  ;;  %v841_v9 = vadd.f32 %v793_v4, %v326_v63 }
  0xdc   : > { %1025 = vst.msk [vmem:[%s1668_s23 + $0x10] sm:$0xf] %vm1020_vm3, %v992_v7  ;;  %v908_v10 = vld [vmem:[#allocation2 + $0xa0] sm:$0xff]  ;;  %v826_v11 = vadd.f32 %v756_v8, %v311_v5 }
  0xdd   : > { %v944_v12 = vadd.f32 %v1658_v59, %v908_v10  ;;  %v893_v13 = vld [vmem:[#allocation2 + $0x28] sm:$0xff]  ;;  %874 = vst.msk [vmem:[#allocation2 + $0xa8] sm:$0xff] %vm272_vm2, %v841_v9  ;;  %v805_v8 = vpop.f32.mrf.mxu3 }
  0xde   : > { %v762_v14 = vpop.f32.mrf.mxu1  ;;  %v929_v15 = vadd.f32 %v1658_v59, %v893_v13  ;;  %859 = vst.msk [vmem:[#allocation2 + $0x30] sm:$0xff] %vm272_vm2, %v826_v11  ;;  %v330_v11 = vld [vmem:[#allocation2 + $0xc8] sm:$0xff] }
  0xdf   : > { %v976_v16 = vmax.f32 %v944_v12, 0.0 }
  0xe0   : > { %v961_v17 = vmax.f32 %v929_v15, 0.0  ;;  %v706_v19 = vpop.f32.mrf.mxu2  ;;  %v315_v15 = vld [vmem:[#allocation2 + $0x50] sm:$0xff] }
  0xe1   : > { %v1008_v20 = vpack.c.bf16 %v976_v16, %v976_v16  ;;  %v796_v21 = vadd.f32 %v795_v41, %v706_v19  ;;  %v668_v23 = vpop.f32.mrf.mxu0 }
  0xe2   : > { %v993_v24 = vpack.c.bf16 %v961_v17, %v961_v17  ;;  %v758_v25 = vadd.f32 %v757_v39, %v668_v23 }
  0xe3   : > { %1041 = vst.msk [vmem:[%s1668_s23 + $0x50] sm:$0xf] %vm1020_vm3, %v1008_v20  ;;  %v842_v27 = vadd.f32 %v796_v21, %v327_v18 }
  0xe4   : > { %1026 = vst.msk [vmem:[%s1668_s23 + $0x14] sm:$0xf] %vm1020_vm3, %v993_v24  ;;  %v909_v28 = vld [vmem:[#allocation2 + $0xa8] sm:$0xff]  ;;  %v827_v29 = vadd.f32 %v758_v25, %v312_v22 }
  0xe5   : > { %v945_v30 = vadd.f32 %v1658_v59, %v909_v28  ;;  %v894_v31 = vld [vmem:[#allocation2 + $0x30] sm:$0xff]  ;;  %875 = vst.msk [vmem:[#allocation2 + $0xb0] sm:$0xff] %vm272_vm2, %v842_v27 }
  0xe6   : > { %v765_v32 = vpop.f32.mrf.mxu1  ;;  %v930_v33 = vadd.f32 %v1658_v59, %v894_v31  ;;  %860 = vst.msk [vmem:[#allocation2 + $0x38] sm:$0xff] %vm272_vm2, %v827_v29  ;;  %v331_v28 = vld [vmem:[#allocation2 + $0xd0] sm:$0xff] }
  0xe7   : > { %v977_v34 = vmax.f32 %v945_v30, 0.0  ;;  %v807_v30 = vpop.f32.mrf.mxu3 }
  0xe8   : > { %v962_v35 = vmax.f32 %v930_v33, 0.0  ;;  %v708_v37 = vpop.f32.mrf.mxu2  ;;  %v316_v33 = vld [vmem:[#allocation2 + $0x58] sm:$0xff] }
  0xe9   : > { %v1009_v38 = vpack.c.bf16 %v977_v34, %v977_v34  ;;  %v798_v39 = vadd.f32 %v797_v1, %v708_v37  ;;  %v671_v41 = vpop.f32.mrf.mxu0 }
  0xea   : > { %v994_v42 = vpack.c.bf16 %v962_v35, %v962_v35  ;;  %v761_v43 = vadd.f32 %v760_v58, %v671_v41 }
  0xeb   : > { %1042 = vst.msk [vmem:[%s1668_s23 + $0x54] sm:$0xf] %vm1020_vm3, %v1009_v38  ;;  %v843_v44 = vadd.f32 %v798_v39, %v328_v36 }
  0xec   : > { %1027 = vst.msk [vmem:[%s1668_s23 + $0x18] sm:$0xf] %vm1020_vm3, %v994_v42  ;;  %v910_v45 = vld [vmem:[#allocation2 + $0xb0] sm:$0xff]  ;;  %v828_v46 = vadd.f32 %v761_v43, %v313_v40 }
  0xed   : > { %v946_v48 = vadd.f32 %v1658_v59, %v910_v45  ;;  %v895_v49 = vld [vmem:[#allocation2 + $0x38] sm:$0xff]  ;;  %876 = vst.msk [vmem:[#allocation2 + $0xb8] sm:$0xff] %vm272_vm2, %v843_v44 }
  0xee   : > { %v767_v50 = vpop.f32.mrf.mxu1  ;;  %v931_v51 = vadd.f32 %v1658_v59, %v895_v49  ;;  %861 = vst.msk [vmem:[#allocation2 + $0x40] sm:$0xff] %vm272_vm2, %v828_v46  ;;  %v332_v46 = vld [vmem:[#allocation2 + $0xd8] sm:$0xff] }
  0xef   : > { %v978_v52 = vmax.f32 %v946_v48, 0.0 }
  0xf0   : > { %v963_v53 = vmax.f32 %v931_v51, 0.0  ;;  %v711_v56 = vpop.f32.mrf.mxu2 }
  0xf1   : > { %v1010_v57 = vpack.c.bf16 %v978_v52, %v978_v52  ;;  %v801_v58 = vadd.f32 %v800_v26, %v711_v56  ;;  %v673_v61 = vpop.f32.mrf.mxu0 }
  0xf2   : > { %v995_v62 = vpack.c.bf16 %v963_v53, %v963_v53  ;;  %v763_v63 = vadd.f32 %v762_v14, %v673_v61  ;;  %v810_v53 = vpop.f32.mrf.mxu3 }
  0xf3   : > { %1043 = vst.msk [vmem:[%s1668_s23 + $0x58] sm:$0xf] %vm1020_vm3, %v1010_v57  ;;  %v844_v0 = vadd.f32 %v801_v58, %v329_v54 }
  0xf4   : > { %1028 = vst.msk [vmem:[%s1668_s23 + $0x1c] sm:$0xf] %vm1020_vm3, %v995_v62  ;;  %v911_v1 = vld [vmem:[#allocation2 + $0xb8] sm:$0xff]  ;;  %v829_v3 = vadd.f32 %v763_v63, %v314_v60 }
  0xf5   : > { %v947_v4 = vadd.f32 %v1658_v59, %v911_v1  ;;  %v896_v5 = vld [vmem:[#allocation2 + $0x40] sm:$0xff]  ;;  %877 = vst.msk [vmem:[#allocation2 + $0xc0] sm:$0xff] %vm272_vm2, %v844_v0 }
  0xf6   : > { %v770_v6 = vpop.f32.mrf.mxu1  ;;  %v932_v7 = vadd.f32 %v1658_v59, %v896_v5  ;;  %862 = vst.msk [vmem:[#allocation2 + $0x48] sm:$0xff] %vm272_vm2, %v829_v3  ;;  %v333_v3 = vld [vmem:[#allocation2 + $0xe0] sm:$0xff] }
  0xf7   : > { %v979_v9 = vmax.f32 %v947_v4, 0.0 }
  0xf8   : > { %v964_v10 = vmax.f32 %v932_v7, 0.0  ;;  %v713_v12 = vpop.f32.mrf.mxu2  ;;  %v318_v7 = vld [vmem:[#allocation2 + $0x68] sm:$0xff] }
  0xf9   : > { %v1011_v13 = vpack.c.bf16 %v979_v9, %v979_v9  ;;  %v803_v14 = vadd.f32 %v802_v47, %v713_v12  ;;  %v676_v16 = vpop.f32.mrf.mxu0 }
  0xfa   : > { %v996_v17 = vpack.c.bf16 %v964_v10, %v964_v10  ;;  %v766_v18 = vadd.f32 %v765_v32, %v676_v16 }
  0xfb   : > { %1044 = vst.msk [vmem:[%s1668_s23 + $0x5c] sm:$0xf] %vm1020_vm3, %v1011_v13  ;;  %v845_v19 = vadd.f32 %v803_v14, %v330_v11  ;;  %v812_v13 = vpop.f32.mrf.mxu3 }
  0xfc   : > { %1029 = vst.msk [vmem:[%s1668_s23 + $0x20] sm:$0xf] %vm1020_vm3, %v996_v17  ;;  %v912_v20 = vld [vmem:[#allocation2 + $0xc0] sm:$0xff]  ;;  %v830_v21 = vadd.f32 %v766_v18, %v315_v15 }
  0xfd   : > { %v948_v22 = vadd.f32 %v1658_v59, %v912_v20  ;;  %v897_v23 = vld [vmem:[#allocation2 + $0x48] sm:$0xff]  ;;  %878 = vst.msk [vmem:[#allocation2 + $0xc8] sm:$0xff] %vm272_vm2, %v845_v19  ;;  %v321_v17 = vld [vmem:[#allocation2 + $0x80] sm:$0xff] }
  0xfe   : > { %v772_v24 = vpop.f32.mrf.mxu1  ;;  %v933_v25 = vadd.f32 %v1658_v59, %v897_v23  ;;  %863 = vst.msk [vmem:[#allocation2 + $0x50] sm:$0xff] %vm272_vm2, %v830_v21 }
  0xff   : > { %v980_v26 = vmax.f32 %v948_v22, 0.0 }
 0x100   : > { %v965_v27 = vmax.f32 %v933_v25, 0.0  ;;  %v716_v29 = vpop.f32.mrf.mxu2 }
 0x101   : > { %v1012_v31 = vpack.c.bf16 %v980_v26, %v980_v26  ;;  %v806_v32 = vadd.f32 %v805_v8, %v716_v29  ;;  %v678_v34 = vpop.f32.mrf.mxu0 }
 0x102   : > { %v997_v35 = vpack.c.bf16 %v965_v27, %v965_v27  ;;  %v768_v36 = vadd.f32 %v767_v50, %v678_v34  ;;  %v317_v50 = vld [vmem:[#allocation2 + $0x60] sm:$0xff] }
 0x103   : > { %1045 = vst.msk [vmem:[%s1668_s23 + $0x60] sm:$0xf] %vm1020_vm3, %v1012_v31  ;;  %v846_v37 = vadd.f32 %v806_v32, %v331_v28  ;;  %v319_v28 = vld [vmem:[#allocation2 + $0x70] sm:$0xff] }
 0x104   : > { %1030 = vst.msk [vmem:[%s1668_s23 + $0x24] sm:$0xf] %vm1020_vm3, %v997_v35  ;;  %v913_v38 = vld [vmem:[#allocation2 + $0xc8] sm:$0xff]  ;;  %v831_v39 = vadd.f32 %v768_v36, %v316_v33 }
 0x105   : > { %v949_v40 = vadd.f32 %v1658_v59, %v913_v38  ;;  %v898_v41 = vld [vmem:[#allocation2 + $0x50] sm:$0xff]  ;;  %879 = vst.msk [vmem:[#allocation2 + $0xd0] sm:$0xff] %vm272_vm2, %v846_v37  ;;  %v322_v36 = vld [vmem:[#allocation2 + $0x88] sm:$0xff] }
 0x106   : > { %v775_v42 = vpop.f32.mrf.mxu1  ;;  %v934_v43 = vadd.f32 %v1658_v59, %v898_v41  ;;  %864 = vst.msk [vmem:[#allocation2 + $0x58] sm:$0xff] %vm272_vm2, %v831_v39  ;;  %v815_v39 = vpop.f32.mrf.mxu3 }
 0x107   : > { %v981_v44 = vmax.f32 %v949_v40, 0.0 }
 0x108   : > { %v966_v45 = vmax.f32 %v934_v43, 0.0  ;;  %v718_v47 = vpop.f32.mrf.mxu2 }
 0x109   : > { %v1013_v48 = vpack.c.bf16 %v981_v44, %v981_v44  ;;  %v808_v49 = vadd.f32 %v807_v30, %v718_v47  ;;  %v681_v51 = vpop.f32.mrf.mxu0  ;;  %v335_v44 = vld [vmem:[#allocation2 + $0xf0] sm:$0xff] }
 0x10a   : > { %v998_v52 = vpack.c.bf16 %v966_v45, %v966_v45  ;;  %v771_v54 = vadd.f32 %v770_v6, %v681_v51 }
 0x10b   : > { %1046 = vst.msk [vmem:[%s1668_s23 + $0x64] sm:$0xf] %vm1020_vm3, %v1013_v48  ;;  %v847_v56 = vadd.f32 %v808_v49, %v332_v46  ;;  %v320_v49 = vld [vmem:[#allocation2 + $0x78] sm:$0xff] }
 0x10c   : > { %1031 = vst.msk [vmem:[%s1668_s23 + $0x28] sm:$0xf] %vm1020_vm3, %v998_v52  ;;  %v914_v57 = vld [vmem:[#allocation2 + $0xd0] sm:$0xff]  ;;  %v832_v58 = vadd.f32 %v771_v54, %v317_v50 }
 0x10d   : > { %v950_v60 = vadd.f32 %v1658_v59, %v914_v57  ;;  %v899_v61 = vld [vmem:[#allocation2 + $0x58] sm:$0xff]  ;;  %880 = vst.msk [vmem:[#allocation2 + $0xd8] sm:$0xff] %vm272_vm2, %v847_v56 }
 0x10e   : > { %v1747_v62 = vpop.f32.mrf.mxu1  ;;  %v935_v63 = vadd.f32 %v1658_v59, %v899_v61  ;;  %865 = vst.msk [vmem:[#allocation2 + $0x60] sm:$0xff] %vm272_vm2, %v832_v58 }
 0x10f   : > { %v982_v0 = vmax.f32 %v950_v60, 0.0 }
 0x110   : > { %v967_v1 = vmax.f32 %v935_v63, 0.0  ;;  %v721_v4 = vpop.f32.mrf.mxu2 }
 0x111   : > { %v1014_v5 = vpack.c.bf16 %v982_v0, %v982_v0  ;;  %v811_v6 = vadd.f32 %v810_v53, %v721_v4  ;;  %v683_v8 = vpop.f32.mrf.mxu0 }
 0x112   : > { %v999_v9 = vpack.c.bf16 %v967_v1, %v967_v1  ;;  %v773_v10 = vadd.f32 %v772_v24, %v683_v8  ;;  %v334_v24 = vld [vmem:[#allocation2 + $0xe8] sm:$0xff]  ;;  %v817_v1 = vpop.f32.mrf.mxu3 }
 0x113   : > { %1047 = vst.msk [vmem:[%s1668_s23 + $0x68] sm:$0xf] %vm1020_vm3, %v1014_v5  ;;  %v848_v11 = vadd.f32 %v811_v6, %v333_v3  ;;  %v336_v3 = vld [vmem:[#allocation2 + $0xf8] sm:$0xff] }
 0x114   : > { %1032 = vst.msk [vmem:[%s1668_s23 + $0x2c] sm:$0xf] %vm1020_vm3, %v999_v9  ;;  %v915_v12 = vld [vmem:[#allocation2 + $0xd8] sm:$0xff]  ;;  %v833_v14 = vadd.f32 %v773_v10, %v318_v7 }
 0x115   : > { %v951_v15 = vadd.f32 %v1658_v59, %v915_v12  ;;  %v900_v16 = vld [vmem:[#allocation2 + $0x60] sm:$0xff]  ;;  %881 = vst.msk [vmem:[#allocation2 + $0xe0] sm:$0xff] %vm272_vm2, %v848_v11 }
 0x116   : > { %v780_v18 = vpop.f32.mrf.mxu1  ;;  %v936_v19 = vadd.f32 %v1658_v59, %v900_v16  ;;  %866 = vst.msk [vmem:[#allocation2 + $0x68] sm:$0xff] %vm272_vm2, %v833_v14 }
 0x117   : > { %v781_v20 = vadd.f32 %v780_v18, %v1653_v55  ;;  %v983_v21 = vmax.f32 %v951_v15, 0.0 }
 0x118   : > { %v968_v22 = vmax.f32 %v936_v19, 0.0  ;;  %v723_v25 = vpop.f32.mrf.mxu2 }
 0x119   : > { %v836_v23 = vadd.f32 %v781_v20, %v321_v17  ;;  %v1015_v26 = vpack.c.bf16 %v983_v21, %v983_v21  ;;  %v813_v27 = vadd.f32 %v812_v13, %v723_v25  ;;  %v686_v29 = vpop.f32.mrf.mxu0 }
 0x11a   : > { %v1000_v30 = vpack.c.bf16 %v968_v22, %v968_v22  ;;  %v776_v31 = vadd.f32 %v775_v42, %v686_v29 }
 0x11b   : > { %869 = vst.msk [vmem:[#allocation2 + $0x80] sm:$0xff] %vm272_vm2, %v836_v23  ;;  %v849_v32 = vadd.f32 %v813_v27, %v334_v24 }
 0x11c   : > { %1048 = vst.msk [vmem:[%s1668_s23 + $0x6c] sm:$0xf] %vm1020_vm3, %v1015_v26  ;;  %v916_v33 = vld [vmem:[#allocation2 + $0xe0] sm:$0xff]  ;;  %v834_v55 = vadd.f32 %v776_v31, %v319_v28 }
 0x11d   : > { %1033 = vst.msk [vmem:[%s1668_s23 + $0x30] sm:$0xf] %vm1020_vm3, %v1000_v30  ;;  %v952_v34 = vadd.f32 %v1658_v59, %v916_v33  ;;  %v901_v35 = vld [vmem:[#allocation2 + $0x68] sm:$0xff] }
 0x11e   : > { %882 = vst.msk [vmem:[#allocation2 + $0xe8] sm:$0xff] %vm272_vm2, %v849_v32  ;;  %v782_v37 = vpop.f32.mrf.mxu1  ;;  %v937_v38 = vadd.f32 %v1658_v59, %v901_v35 }
 0x11f   : > { %867 = vst.msk [vmem:[#allocation2 + $0x70] sm:$0xff] %vm272_vm2, %v834_v55  ;;  %v783_v40 = vadd.f32 %v782_v37, %v1663_v2  ;;  %v984_v41 = vmax.f32 %v952_v34, 0.0 }
 0x120   : > { %v969_v42 = vmax.f32 %v937_v38, 0.0  ;;  %v726_v45 = vpop.f32.mrf.mxu2 }
 0x121   : > { %v837_v43 = vadd.f32 %v783_v40, %v322_v36  ;;  %v1016_v46 = vpack.c.bf16 %v984_v41, %v984_v41  ;;  %v816_v48 = vadd.f32 %v815_v39, %v726_v45  ;;  %v688_v50 = vpop.f32.mrf.mxu0 }
 0x122   : > { %v904_v47 = vld [vmem:[#allocation2 + $0x80] sm:$0xff]  ;;  %v1001_v51 = vpack.c.bf16 %v969_v42, %v969_v42  ;;  %v778_v53 = vadd.f32 %v1747_v62, %v688_v50 }
 0x123   : > { %v940_v52 = vadd.f32 %v1658_v59, %v904_v47  ;;  %870 = vst.msk [vmem:[#allocation2 + $0x88] sm:$0xff] %vm272_vm2, %v837_v43  ;;  %v850_v2 = vadd.f32 %v816_v48, %v335_v44 }
 0x124   : > { %1049 = vst.msk [vmem:[%s1668_s23 + $0x70] sm:$0xf] %vm1020_vm3, %v1016_v46  ;;  %v835_v57 = vadd.f32 %v778_v53, %v320_v49 }
 0x125   : > { %1034 = vst.msk [vmem:[%s1668_s23 + $0x34] sm:$0xf] %vm1020_vm3, %v1001_v51  ;;  %v972_v54 = vmax.f32 %v940_v52, 0.0  ;;  %v917_v56 = vld [vmem:[#allocation2 + $0xe8] sm:$0xff] }
 0x126   : > { %v953_v58 = vadd.f32 %v1658_v59, %v917_v56  ;;  %v902_v60 = vld [vmem:[#allocation2 + $0x70] sm:$0xff]  ;;  %883 = vst.msk [vmem:[#allocation2 + $0xf0] sm:$0xff] %vm272_vm2, %v850_v2 }
 0x127   : > { %v1004_v61 = vpack.c.bf16 %v972_v54, %v972_v54  ;;  %v938_v63 = vadd.f32 %v1658_v59, %v902_v60  ;;  %868 = vst.msk [vmem:[#allocation2 + $0x78] sm:$0xff] %vm272_vm2, %v835_v57 }
 0x128   : > { %v985_v62 = vmax.f32 %v953_v58, 0.0  ;;  %v728_v4 = vpop.f32.mrf.mxu2 }
 0x129   : > { %1037 = vst.msk [vmem:[%s1668_s23 + $0x40] sm:$0xf] %vm1020_vm3, %v1004_v61  ;;  %v970_v0 = vmax.f32 %v938_v63, 0.0  ;;  %v818_v7 = vadd.f32 %v817_v1, %v728_v4 }
 0x12a   : > { %v1017_v5 = vpack.c.bf16 %v985_v62, %v985_v62  ;;  %v905_v6 = vld [vmem:[#allocation2 + $0x88] sm:$0xff] }
 0x12b   : > { %v1002_v8 = vpack.c.bf16 %v970_v0, %v970_v0  ;;  %v941_v9 = vadd.f32 %v1658_v59, %v905_v6  ;;  %v851_v10 = vadd.f32 %v818_v7, %v336_v3 }
 0x12c   : > { %1050 = vst.msk [vmem:[%s1668_s23 + $0x74] sm:$0xf] %vm1020_vm3, %v1017_v5 }
 0x12d   : > { %1035 = vst.msk [vmem:[%s1668_s23 + $0x38] sm:$0xf] %vm1020_vm3, %v1002_v8  ;;  %v973_v11 = vmax.f32 %v941_v9, 0.0  ;;  %v918_v12 = vld [vmem:[#allocation2 + $0xf0] sm:$0xff] }
 0x12e   : > { %v954_v13 = vadd.f32 %v1658_v59, %v918_v12  ;;  %v903_v14 = vld [vmem:[#allocation2 + $0x78] sm:$0xff]  ;;  %884 = vst.msk [vmem:[#allocation2 + $0xf8] sm:$0xff] %vm272_vm2, %v851_v10 }
 0x12f   : > { %v1005_v15 = vpack.c.bf16 %v973_v11, %v973_v11  ;;  %v939_v16 = vadd.f32 %v1658_v59, %v903_v14 }
 0x130   : > { %v986_v17 = vmax.f32 %v954_v13, 0.0 }
 0x131   : > { %1038 = vst.msk [vmem:[%s1668_s23 + $0x44] sm:$0xf] %vm1020_vm3, %v1005_v15  ;;  %v971_v18 = vmax.f32 %v939_v16, 0.0 }
 0x132   : > { %v1018_v19 = vpack.c.bf16 %v986_v17, %v986_v17 }
 0x133   : > { %v1003_v20 = vpack.c.bf16 %v971_v18, %v971_v18 }
 0x134   : > { %1051 = vst.msk [vmem:[%s1668_s23 + $0x78] sm:$0xf] %vm1020_vm3, %v1018_v19 }
 0x135   : > { %1036 = vst.msk [vmem:[%s1668_s23 + $0x3c] sm:$0xf] %vm1020_vm3, %v1003_v20  ;;  %v919_v21 = vld [vmem:[#allocation2 + $0xf8] sm:$0xff] }
 0x136   : > { %v955_v22 = vadd.f32 %v1658_v59, %v919_v21 }
 0x138   : > { %v987_v23 = vmax.f32 %v955_v22, 0.0 }
 0x13a   : > { %v1019_v24 = vpack.c.bf16 %v987_v23, %v987_v23 }
 0x13c   : > { %1052 = vst.msk [vmem:[%s1668_s23 + $0x7c] sm:$0xf] %vm1020_vm3, %v1019_v24 }
 0x13d PF: > { %s13_s14 = sadd.s32 1, %s1461_s14   ;;  %s1813_s12 = smov %s1457_s13 }
 0x13e   : > { %p10_p5 = scmp.ge.s32.totalorder %s13_s14, 4   ;;  %s1814_s13 = smov %s1816_s15 }
 0x140   :  { %12 = sbr.rel (!%p10_p5) target bundleno = 2 (0x2), region = 76 }

</bundles_post_ra>
